<compile_context>
chip_gen: v5e
topology: v5e:2x2
jax: 0.10.0
libtpu: 0.0.40
codegen_flags: <defaults>
</compile_context>

<pallas_src>
from functools import lru_cache, partial

import numpy as np
import jax
import jax.numpy as jnp
from jax.experimental import pallas as pl
from jax.experimental.pallas import tpu as pltpu


def _bilinear_matrix(out_size: int, in_size: int) -> np.ndarray:
    """Row-stochastic (out_size, in_size) matrix reproducing torch/kornia bilinear
    resize with align_corners=False (F.interpolate default used by kornia.resize)."""
    scale = in_size / out_size
    dst = np.arange(out_size, dtype=np.float64)
    src = (dst + 0.5) * scale - 0.5
    src = np.clip(src, 0.0, None)              # ATen clamps negative source coords to 0
    idx0 = np.clip(np.floor(src).astype(np.int64), 0, in_size - 1)
    idx1 = np.minimum(idx0 + 1, in_size - 1)
    lam = np.clip(src - idx0, 0.0, 1.0)
    w = np.zeros((out_size, in_size), dtype=np.float64)
    rows = np.arange(out_size)
    w[rows, idx0] += 1.0 - lam
    w[rows, idx1] += lam
    return w


@lru_cache(maxsize=None)
def _interp_weights(out_size: int, h_in: int, w_in: int, channels: int, block: int):
    """Host-side, cached construction of the kernel's constant matrices.

    wh_blk: (block*out_size, block*h_in)  block-diagonal row-interp matrix
            (one Wh block per image stacked in a grid step), 1/255 folded in.
            Size scales O(block^2): 128 KiB at block=8, ~2 MiB at block=32.
    b     : (w_in*C, C*L)  lane-aligned, channel-permuted column-interp matrix,
            L = round_up(out_size, 128):  b[w*C + c, c*L + p] = Ww[p, w].
    """
    wh = _bilinear_matrix(out_size, h_in) * (1.0 / 255.0)
    wh_blk = np.kron(np.eye(block), wh).astype(np.float32)          # block-diag
    ww_t = _bilinear_matrix(out_size, w_in).T                       # (w_in, out_size)
    lane = ((out_size + 127) // 128) * 128                          # 128-aligned stride
    b = np.zeros((w_in * channels, channels * lane), dtype=np.float32)
    for c in range(channels):
        b[c::channels, c * lane:c * lane + out_size] = ww_t
    return wh_blk, b, lane


def _preprocess_kernel(x_ref, wh_ref, b_ref, o_ref):
    # x_ref : (B*H_in, W_in*C)     uint8, B images of this grid step stacked along rows
    # wh_ref: (B*H_out, B*H_in)    f32 block-diagonal row interpolation (includes /255)
    # b_ref : (W_in*C, C*L)        f32 lane-aligned column interpolation (L = 128-aligned)
    # o_ref : (B, C, H_out, W_out) f32 CHW output block
    B, C, H_out, W_out = o_ref.shape
    L = b_ref.shape[1] // C
    x = x_ref[...].astype(jnp.float32)                                   # u8 -> f32 (VPU)
    t = jnp.dot(wh_ref[...], x, preferred_element_type=jnp.float32)      # (B*H_out, W_in*C)
    y = jnp.dot(t, b_ref[...], preferred_element_type=jnp.float32)       # (B*H_out, C*L)
    y = y.reshape(B, H_out, C * L)                                       # split leading dim (layout-preserving)
    for c in range(C):                                                   # static unroll, 128-aligned lane slices
        o_ref[:, c, :, :] = y[:, :, c * L:c * L + W_out]


@partial(jax.jit, static_argnames=("input_size", "block"))
def preprocess_batch(x_nhwc_uint8: jax.Array, input_size: int = 32, block: int = 8) -> jax.Array:
    """Batched Preprocess: (N, H, W, C) uint8 -> (N, C, input_size, input_size) f32."""
    N, H_in, W_in, C = x_nhwc_uint8.shape
    n_blocks = -(-N // block)
    n_pad = n_blocks * block
    x = x_nhwc_uint8
    if n_pad != N:
        x = jnp.pad(x, ((0, n_pad - N), (0, 0), (0, 0), (0, 0)))

    wh_np, b_np, lane = _interp_weights(input_size, H_in, W_in, C, block)
    wh = jnp.asarray(wh_np)          # jit-time constants, VMEM-resident across grid steps
    b = jnp.asarray(b_np)

    # Contiguous view: images stacked along rows, W & C folded into lanes; stays uint8.
    x2d = x.reshape(n_pad * H_in, W_in * C)

    out = pl.pallas_call(
        _preprocess_kernel,
        out_shape=jax.ShapeDtypeStruct((n_pad, C, input_size, input_size), jnp.float32),
        grid=(n_blocks,),
        in_specs=[
            pl.BlockSpec((block * H_in, W_in * C), lambda n: (n, 0)),
            pl.BlockSpec((block * input_size, block * H_in), lambda n: (0, 0)),  # constant: DMA'd once
            pl.BlockSpec((W_in * C, C * lane), lambda n: (0, 0)),                # constant: DMA'd once
        ],
        out_specs=pl.BlockSpec((block, C, input_size, input_size), lambda n: (n, 0, 0, 0)),
        compiler_params=pltpu.CompilerParams(dimension_semantics=("parallel",)),
    )(x2d, wh, b)

    if n_pad != N:
        out = out[:N]
    return out


def preprocess(x_hwc_uint8: jax.Array, input_size: int = 32) -> jax.Array:
    """Exact Preprocess(input_size).forward(x) semantics for one HWC uint8 image."""
    return preprocess_batch(x_hwc_uint8[None], input_size=input_size, block=1)[0]


if __name__ == "__main__":
    key = jax.random.PRNGKey(0)
    N, H_IN, W_IN, C = 16, 16, 16, 3
    INPUT_SIZE = 32
    BLOCK = 8

    # Deterministic synthetic uint8 images (what the module would receive as np arrays).
    imgs_u8 = jax.random.randint(key, (N, H_IN, W_IN, C), 0, 256, dtype=jnp.int32).astype(jnp.uint8)

    out = preprocess_batch(imgs_u8, input_size=INPUT_SIZE, block=BLOCK)
    out = jax.block_until_ready(out)

    # Single-image path (block=1), matching the module's (C, S, S) output exactly.
    out1 = jax.block_until_ready(preprocess(imgs_u8[0], input_size=INPUT_SIZE))

    # Pure numpy reference of the module semantics:
    #   HWC u8 -> /255 -> bilinear resize (align_corners=False) -> CHW.
    img_f = np.asarray(imgs_u8).astype(np.float64) / 255.0
    wh_ref = _bilinear_matrix(INPUT_SIZE, H_IN)
    ww_ref = _bilinear_matrix(INPUT_SIZE, W_IN)
    ref = np.einsum("oh,nhwc->nowc", wh_ref, img_f)
    ref = np.einsum("pw,nowc->ncop", ww_ref, ref)        # (N, C, H_out, W_out)

    out_np = np.asarray(out, dtype=np.float64)
    assert out.shape == (N, C, INPUT_SIZE, INPUT_SIZE), out.shape
    assert out.dtype == jnp.float32
    assert np.all(np.isfinite(out_np))
    err = float(np.abs(out_np - ref).max())
    assert err < 1e-4, err   # tight enough to catch a degraded bf16 matmul or any layout bug

    assert out1.shape == (C, INPUT_SIZE, INPUT_SIZE), out1.shape
    err1 = float(np.abs(np.asarray(out1, dtype=np.float64) - ref[0]).max())
    assert err1 < 1e-4, err1

    print("KERNEL_OK")
</pallas_src>

<mosaic_0001>
module attributes {stable_mosaic.version = 11 : i64} {
  func.func @_preprocess_kernel(%arg0: i32, %arg1: memref<128x48xi8, #tpu.memory_space<vmem>>, %arg2: memref<256x128xf32, #tpu.memory_space<vmem>>, %arg3: memref<48x384xf32, #tpu.memory_space<vmem>>, %arg4: memref<8x3x32x32xf32, #tpu.memory_space<vmem>>) attributes {dimension_semantics = [#tpu.dimension_semantics<parallel>], iteration_bounds = array<i64: 2>, scalar_prefetch = 0 : i64, scratch_operands = 0 : i64, tpu.core_type = #tpu.core_type<tc>, window_params = [{transform_indices = @transform_0, window_bounds = array<i64: 128, 48>}, {pipeline_mode = #tpu.pipeline_mode<synchronous>, transform_indices = @transform_1, window_bounds = array<i64: 256, 128>}, {pipeline_mode = #tpu.pipeline_mode<synchronous>, transform_indices = @transform_2, window_bounds = array<i64: 48, 384>}, {transform_indices = @transform_3, window_bounds = array<i64: 8, 3, 32, 32>}]} {
    %c0 = arith.constant 0 : index
    %c0_0 = arith.constant 0 : index
    %0 = vector.load %arg1[%c0, %c0_0] : memref<128x48xi8, #tpu.memory_space<vmem>>, vector<128x48xi8>
    %1 = arith.uitofp %0 : vector<128x48xi8> to vector<128x48xf32>
    %c0_1 = arith.constant 0 : index
    %c0_2 = arith.constant 0 : index
    %2 = vector.load %arg2[%c0_1, %c0_2] : memref<256x128xf32, #tpu.memory_space<vmem>>, vector<256x128xf32>
    %cst = arith.constant dense<0.000000e+00> : vector<256x48xf32>
    %3 = tpu.matmul %2, %1, %cst {dimension_numbers = #tpu.dot_dimension_numbers<[1], [0], [0], [1], [0, 0, 1, 1], [], []>} : vector<256x128xf32>, vector<128x48xf32>, vector<256x48xf32> -> vector<256x48xf32>
    %c0_3 = arith.constant 0 : index
    %c0_4 = arith.constant 0 : index
    %4 = vector.load %arg3[%c0_3, %c0_4] : memref<48x384xf32, #tpu.memory_space<vmem>>, vector<48x384xf32>
    %cst_5 = arith.constant dense<0.000000e+00> : vector<256x384xf32>
    %5 = tpu.matmul %3, %4, %cst_5 {dimension_numbers = #tpu.dot_dimension_numbers<[1], [0], [0], [1], [0, 0, 1, 1], [], []>} : vector<256x48xf32>, vector<48x384xf32>, vector<256x384xf32> -> vector<256x384xf32>
    %6 = vector.shape_cast %5 : vector<256x384xf32> to vector<8x32x384xf32>
    %7 = vector.extract_strided_slice %6 {offsets = [0, 0, 0], sizes = [8, 32, 32], strides = [1, 1, 1]} : vector<8x32x384xf32> to vector<8x32x32xf32>
    %c0_6 = arith.constant 0 : index
    %c0_7 = arith.constant 0 : index
    %c0_8 = arith.constant 0 : index
    %c0_9 = arith.constant 0 : index
    %8 = vector.load %arg4[%c0_6, %c0_7, %c0_8, %c0_9] : memref<8x3x32x32xf32, #tpu.memory_space<vmem>>, vector<8x1x32x32xf32>
    %9 = vector.shape_cast %8 : vector<8x1x32x32xf32> to vector<8x32x32xf32>
    %10 = vector.shape_cast %7 : vector<8x32x32xf32> to vector<8x1x32x32xf32>
    tpu.vector_store %arg4[%c0_6, %c0_7, %c0_8, %c0_9], %10 {strides = array<i32>} : memref<8x3x32x32xf32, #tpu.memory_space<vmem>>, vector<8x1x32x32xf32>,
    %11 = vector.extract_strided_slice %6 {offsets = [0, 0, 128], sizes = [8, 32, 32], strides = [1, 1, 1]} : vector<8x32x384xf32> to vector<8x32x32xf32>
    %c0_10 = arith.constant 0 : index
    %c1 = arith.constant 1 : index
    %c0_11 = arith.constant 0 : index
    %c0_12 = arith.constant 0 : index
    %12 = vector.load %arg4[%c0_10, %c1, %c0_11, %c0_12] : memref<8x3x32x32xf32, #tpu.memory_space<vmem>>, vector<8x1x32x32xf32>
    %13 = vector.shape_cast %12 : vector<8x1x32x32xf32> to vector<8x32x32xf32>
    %14 = vector.shape_cast %11 : vector<8x32x32xf32> to vector<8x1x32x32xf32>
    tpu.vector_store %arg4[%c0_10, %c1, %c0_11, %c0_12], %14 {strides = array<i32>} : memref<8x3x32x32xf32, #tpu.memory_space<vmem>>, vector<8x1x32x32xf32>,
    %15 = vector.extract_strided_slice %6 {offsets = [0, 0, 256], sizes = [8, 32, 32], strides = [1, 1, 1]} : vector<8x32x384xf32> to vector<8x32x32xf32>
    %c0_13 = arith.constant 0 : index
    %c2 = arith.constant 2 : index
    %c0_14 = arith.constant 0 : index
    %c0_15 = arith.constant 0 : index
    %16 = vector.load %arg4[%c0_13, %c2, %c0_14, %c0_15] : memref<8x3x32x32xf32, #tpu.memory_space<vmem>>, vector<8x1x32x32xf32>
    %17 = vector.shape_cast %16 : vector<8x1x32x32xf32> to vector<8x32x32xf32>
    %18 = vector.shape_cast %15 : vector<8x32x32xf32> to vector<8x1x32x32xf32>
    tpu.vector_store %arg4[%c0_13, %c2, %c0_14, %c0_15], %18 {strides = array<i32>} : memref<8x3x32x32xf32, #tpu.memory_space<vmem>>, vector<8x1x32x32xf32>,
    return
  }
  func.func @transform_0(%arg0: i32) -> (i32, i32) {
    %c0_i32 = arith.constant 0 : i32
    %c0_i32_0 = arith.constant 0 : i32
    return %arg0, %c0_i32 : i32, i32
  }
  func.func @transform_1(%arg0: i32) -> (i32, i32) {
    %c0_i32 = arith.constant 0 : i32
    %c0_i32_0 = arith.constant 0 : i32
    %c0_i32_1 = arith.constant 0 : i32
    return %c0_i32, %c0_i32_0 : i32, i32
  }
  func.func @transform_2(%arg0: i32) -> (i32, i32) {
    %c0_i32 = arith.constant 0 : i32
    %c0_i32_0 = arith.constant 0 : i32
    %c0_i32_1 = arith.constant 0 : i32
    return %c0_i32, %c0_i32_0 : i32, i32
  }
  func.func @transform_3(%arg0: i32) -> (i32, i32, i32, i32) {
    %c0_i32 = arith.constant 0 : i32
    %c0_i32_0 = arith.constant 0 : i32
    %c0_i32_1 = arith.constant 0 : i32
    %c0_i32_2 = arith.constant 0 : i32
    return %arg0, %c0_i32, %c0_i32_0, %c0_i32_1 : i32, i32, i32, i32
  }
}

</mosaic_0001>

<bundles_post_ra>
// kernel: preprocess_batch.1
= control target key start
LH: loop header
LB: loop body
LE: loop exit
PB: predicated region body
PF: predicated region fallthrough
CT: control target
= control target key end

     0   :  { %8 = vsyncpa [#allocation3], 0  ;;  %s1836_s0 = inlined_call_operand.vmem [shape: u8[256,48], index: 0, kind: input, shape index: {}]   ;;  %s1837_s1 = inlined_call_operand.vmem [shape: f32[256,128], index: 1, kind: input, shape index: {}]   ;;  %s1838_s2 = inlined_call_operand.vmem [shape: f32[48,384], index: 2, kind: input, shape index: {}]   ;;  %s1839_s3 = inlined_call_operand.hbm [shape: f32[16,3,32,32], index: 3, kind: output, shape index: {}]  }
   0x1   :  { %10 = vsyncpa [#allocation3 + $0x1], 0  ;;  %s1301_s12 = smov 0   ;;  %s1303_s13 = smov 0  }
   0x2   :  { %s1305_s14 = smov 0   ;;  %s1307_s15 = smov 0  }
   0x3 LB: > { %s1322_s16 = sadd.s32 4294967295, %s1277_s15   ;;  %s1001_s17 = sadd.s32 4294967294, %s1277_s15   ;;  %s1277_s15 = sphi %s1307_s15, %s1845_s15   ;;  %s1273_s14 = sphi %s1305_s14, %s1844_s14   ;;  %s1269_s13 = sphi %s1303_s13, %s1843_s13   ;;  %s1265_s12 = sphi %s1301_s12, %s1842_s12  }
   0x4   : > { %s1326_s18 = sadd.s32 1, %s1277_s15   ;;  %s91_s19 = sadd.s32 1, %s1273_s14 }
   0x5   : > { %s88_s20 = ssub.s32 %s1277_s15, %s1326_s18  ;;  %p101_p0 = scmp.ne.s32.totalorder %s1273_s14, %s1269_s13 }
   0x6   : > { %p89_p1 = scmp.eq.s32.totalorder %s88_s20, 0  ;;  %p102_p2 = scmp.eq.s32.totalorder %s1322_s16, 1 }
   0x7   : > { %p107_p3 = scmp.ne.s32.totalorder %s1269_s13, %s1265_s12  ;;  %p108_p4 = scmp.eq.s32.totalorder %s1001_s17, 1 }
   0x8   : > { %s1337_s21 = scalar_select %p89_p1, %s1273_s14, %s91_s19  }
   0x9   : > { %p1339_p5 = por %p102_p2, %p101_p0  ;;  %p1343_p6 = por %p108_p4, %p107_p3 }
   0xa   : > { %p1004_p7 = scmp.ge.s32.totalorder %s1277_s15, 1  ;;  %p141_p8 = scmp.lt.s32.totalorder %s1277_s15, 3 }
   0xc   : > { %p142_p9 = pnand %p1004_p7, %p141_p8 }
   0xd   : > { %s1005_s24 = sshll.u32 (!%p142_p9), %s1322_s16, 2  ;;  %s162_s10 = sand.u32 (!%p142_p9), 1, %s1269_s13  }
   0xe   : > { %145 = sbr.rel (%p142_p9) target bundleno = 571 (0x23b), region = 32  ;;  %p166_p10 = scmp.lt.s32.totalorder (!%p142_p9), %s1005_s24, 7 }
   0xf   : > { %s1172_s19 = smul.u32 (!%p142_p9), 768, %s162_s10  ;;  %s1235_s7 = scalar_lea.hbm (!%p142_p9), %s1839_s3, 1536 }
  0x11   : > { %s1560_s20 = scalar_lea.vmem (!%p142_p9), [#allocation2], %s1172_s19 }
  0x13   : > { %s1847_s24 = smov (!%p166_p10, %s1005_s24), 7  ;;  %v224_v52 = vld [vmem:[%s1837_s1] sm:$0xff]  ;;  %v225_v53 = vld [vmem:[%s1837_s1 + $0x8] sm:$0xff]  ;;  %v226_v54 = vld [vmem:[%s1837_s1 + $0x10] sm:$0xff]  ;;  %vm387_vm0 = vcmask 392192   ;;  %vm823_vm1 = vcmask 261120  }
  0x14   : > { %s1006_s25 = sshll.u32 %s1847_s24, 3  ;;  %v227_v55 = vld [vmem:[%s1837_s1 + $0x18] sm:$0xff]  ;;  %v228_v56 = vld [vmem:[%s1837_s1 + $0x20] sm:$0xff]  ;;  %v229_v57 = vld [vmem:[%s1837_s1 + $0x28] sm:$0xff]  ;;  %s1173_s24 = smul.u32 768, %s1322_s16 }
  0x15   : > { %s1353_s28 = scalar_lea.vmem %s1836_s0, %s1006_s25  ;;  %v230_v58 = vld [vmem:[%s1837_s1 + $0x30] sm:$0xff]  ;;  %v231_v59 = vld [vmem:[%s1837_s1 + $0x38] sm:$0xff]  ;;  %v232_v60 = vld [vmem:[%s1837_s1 + $0x40] sm:$0xff]  ;;  %s923_s16 = scalar_lea.sflag [#allocation3], %s162_s10 }
  0x16   : > { %v175_v0 = vld [vmem:[%s1353_s28 + $0x18] sm:$0xff]  ;;  %v174_v1 = vld [vmem:[%s1353_s28 + $0x10] sm:$0xff]  ;;  %v173_v17 = vld [vmem:[%s1353_s28 + $0x8] sm:$0xff]  ;;  %s935_s27 = scalar_lea.hbm %s1839_s3, %s1173_s24 }
  0x17   : > { %v191_v2 = vunpack.c.3.s8 %v175_v0  ;;  %v190_v3 = vunpack.c.2.s8 %v175_v0  ;;  %v189_v4 = vunpack.c.1.s8 %v175_v0  ;;  %v188_v5 = vunpack.c.0.s8 %v175_v0  ;;  %v172_v30 = vld [vmem:[%s1353_s28] sm:$0xff]  ;;  %v233_v61 = vld [vmem:[%s1837_s1 + $0x48] sm:$0xff]  ;;  %v234_v62 = vld [vmem:[%s1837_s1 + $0x50] sm:$0xff]  ;;  %s936_s28 = sshll.u32 %s1560_s20, 4  ;;  %s938_s29 = sshll.u32 %s935_s27, 4  ;;  %s937_s28 = int_to_ptr.vmem [resolvable:$true] %s936_s28  ;;  %s939_s29 = int_to_ptr.hbm [resolvable:$true] %s938_s29 }
  0x18   : > { %v187_v9 = vunpack.c.3.s8 %v174_v1  ;;  %v186_v13 = vunpack.c.2.s8 %v174_v1  ;;  %v185_v16 = vunpack.c.1.s8 %v174_v1  ;;  %v184_v20 = vunpack.c.0.s8 %v174_v1  ;;  %v384_v63 = vld [vmem:[%s1838_s2 + $0x78] sm:$0xff]  ;;  %v385_v0 = vld [vmem:[%s1838_s2 + $0x80] sm:$0xff]  ;;  %v386_v1 = vld [vmem:[%s1838_s2 + $0x88] sm:$0xff]  ;;  %s1229_s30 = sshra.s32 %s939_s29, 4  ;;  %s1230_s30 = int_to_ptr.hbm [resolvable:$true] %s1229_s30 }
  0x19   : > { %v207_v6 = vand.u32 255, %v191_v2  ;;  %v206_v7 = vand.u32 255, %v190_v3  ;;  %v205_v8 = vand.u32 255, %v189_v4  ;;  %v204_v12 = vand.u32 255, %v188_v5  ;;  %494 = vmatpush.msra.mxu1 %v384_v63  ;;  %607 = vmatpush.msra.mxu2 %v385_v0  ;;  %v381_v2 = vld [vmem:[%s1838_s2 + $0x60] sm:$0xff]  ;;  %v382_v3 = vld [vmem:[%s1838_s2 + $0x68] sm:$0xff]  ;;  %p1236_p0 = scmp.lt.s32.totalorder %s1230_s30, %s1839_s3 }
  0x1a   : > { %v203_v15 = vand.u32 255, %v187_v9  ;;  %v202_v19 = vand.u32 255, %v186_v13  ;;  %v201_v22 = vand.u32 255, %v185_v16  ;;  %v183_v23 = vunpack.c.3.s8 %v173_v17  ;;  %v383_v4 = vld [vmem:[%s1838_s2 + $0x70] sm:$0xff]  ;;  %720 = vmatpush.msra.mxu3 %v386_v1  ;;  %v378_v5 = vld [vmem:[%s1838_s2 + $0x48] sm:$0xff]  ;;  %v373_v13 = vld [vmem:[%s1838_s2 + $0x20] sm:$0xff] }
  0x1b   : > { %v223_v10 = vcvt.s32.f32 %v207_v6  ;;  %v222_v11 = vcvt.s32.f32 %v206_v7  ;;  %v221_v14 = vcvt.s32.f32 %v205_v8  ;;  %v220_v18 = vcvt.s32.f32 %v204_v12  ;;  %v379_v6 = vld [vmem:[%s1838_s2 + $0x50] sm:$0xff]  ;;  %495 = vmatpush.msra.mxu1 %v381_v2  ;;  %608 = vmatpush.msra.mxu2 %v382_v3  ;;  %v380_v7 = vld [vmem:[%s1838_s2 + $0x58] sm:$0xff]  ;;  %v370_v16 = vld [vmem:[%s1838_s2 + $0x8] sm:$0xff]  ;;  %s1231_s4 = scalar_lea.hbm %s1230_s30, 768 }
  0x1c   : > { %v219_v21 = vcvt.s32.f32 %v203_v15  ;;  %v218_v24 = vcvt.s32.f32 %v202_v19  ;;  %v200_v25 = vand.u32 255, %v184_v20  ;;  %v182_v26 = vunpack.c.2.s8 %v173_v17  ;;  %721 = vmatpush.msra.mxu3 %v383_v4  ;;  %v235_v8 = vld [vmem:[%s1837_s1 + $0x58] sm:$0xff]  ;;  %v375_v9 = vld [vmem:[%s1838_s2 + $0x30] sm:$0xff]  ;;  %v369_v15 = vld [vmem:[%s1838_s2] sm:$0xff]  ;;  %p1232_p11 = scmp.ne.s32.totalorder %s1230_s30, %s1231_s4  ;;  %p1237_p1 = scmp.lt.s32.totalorder %s1235_s7, %s1231_s4 }
  0x1d   : > { %256 = vmatpush.msra.mxu0 %v223_v10  ;;  %v217_v27 = vcvt.s32.f32 %v201_v22  ;;  %v199_v28 = vand.u32 255, %v183_v23  ;;  %v181_v29 = vunpack.c.1.s8 %v173_v17  ;;  %v180_v33 = vunpack.c.0.s8 %v173_v17  ;;  %496 = vmatpush.msra.mxu1 %v378_v5  ;;  %v376_v10 = vld [vmem:[%s1838_s2 + $0x38] sm:$0xff]  ;;  %v371_v17 = vld [vmem:[%s1838_s2 + $0x10] sm:$0xff]  ;;  %v237_v19 = vld [vmem:[%s1837_s1 + $0x68] sm:$0xff] }
  0x1e   : > { %v216_v31 = vcvt.s32.f32 %v200_v25  ;;  %v198_v32 = vand.u32 255, %v182_v26  ;;  %v179_v36 = vunpack.c.3.s8 %v172_v30  ;;  %v178_v39 = vunpack.c.2.s8 %v172_v30  ;;  %609 = vmatpush.msra.mxu2 %v379_v6  ;;  %722 = vmatpush.msra.mxu3 %v380_v7  ;;  %v372_v12 = vld [vmem:[%s1838_s2 + $0x18] sm:$0xff]  ;;  %v238_v20 = vld [vmem:[%s1837_s1 + $0x70] sm:$0xff]  ;;  %v240_v23 = vld [vmem:[%s1837_s1 + $0x80] sm:$0xff]  ;;  %p1233_p12 = pnand %p1232_p11, %p1339_p5  ;;  %p1238_p2 = por %p1237_p1, %p1236_p0 }
  0x1f   : > { %257 = vmatpush.msra.mxu0 %v222_v11  ;;  %v215_v34 = vcvt.s32.f32 %v199_v28  ;;  %v197_v35 = vand.u32 255, %v181_v29  ;;  %v196_v38 = vand.u32 255, %v180_v33  ;;  %v177_v42 = vunpack.c.1.s8 %v172_v30  ;;  %v377_v11 = vld [vmem:[%s1838_s2 + $0x40] sm:$0xff]  ;;  %497 = vmatpush.msra.mxu1 %v375_v9  ;;  %v241_v25 = vld [vmem:[%s1837_s1 + $0x88] sm:$0xff]  ;;  %v243_v29 = vld [vmem:[%s1837_s1 + $0x98] sm:$0xff] }
  0x20   : > { %v214_v37 = vcvt.s32.f32 %v198_v32  ;;  %v195_v41 = vand.u32 255, %v179_v36  ;;  %v194_v44 = vand.u32 255, %v178_v39  ;;  %v176_v45 = vunpack.c.0.s8 %v172_v30  ;;  %610 = vmatpush.msra.mxu2 %v376_v10  ;;  %723 = vmatpush.msra.mxu3 %v377_v11  ;;  %v245_v33 = vld [vmem:[%s1837_s1 + $0xa8] sm:$0xff]  ;;  %v248_v39 = vld [vmem:[%s1837_s1 + $0xc0] sm:$0xff]  ;;  %p1234_p13 = pneg %p1233_p12 }
  0x21   : > { %258 = vmatpush.msra.mxu0 %v221_v14  ;;  %v213_v40 = vcvt.s32.f32 %v197_v35  ;;  %v212_v43 = vcvt.s32.f32 %v196_v38  ;;  %v193_v47 = vand.u32 255, %v177_v42  ;;  %v374_v14 = vld [vmem:[%s1838_s2 + $0x28] sm:$0xff]  ;;  %498 = vmatpush.msra.mxu1 %v372_v12  ;;  %v246_v35 = vld [vmem:[%s1837_s1 + $0xb0] sm:$0xff] }
  0x22   : > { %v211_v46 = vcvt.s32.f32 %v195_v41  ;;  %v210_v48 = vcvt.s32.f32 %v194_v44  ;;  %v192_v49 = vand.u32 255, %v176_v45  ;;  %611 = vmatpush.msra.mxu2 %v373_v13  ;;  %724 = vmatpush.msra.mxu3 %v374_v14  ;;  %v249_v41 = vld [vmem:[%s1837_s1 + $0xc8] sm:$0xff]  ;;  %v251_v45 = vld [vmem:[%s1837_s1 + $0xd8] sm:$0xff]  ;;  %p1239_p3 = pnand %p1238_p2, %p1234_p13 }
  0x23   : > { %259 = vmatpush.msra.mxu0 %v220_v18  ;;  %v209_v50 = vcvt.s32.f32 %v193_v47  ;;  %v236_v18 = vld [vmem:[%s1837_s1 + $0x60] sm:$0xff]  ;;  %499 = vmatpush.msra.mxu1 %v369_v15 }
  0x24   : > { %v208_v51 = vcvt.s32.f32 %v192_v49  ;;  %612 = vmatpush.msra.mxu2 %v370_v16  ;;  %725 = vmatpush.msra.mxu3 %v371_v17  ;;  %v252_v47 = vld [vmem:[%s1837_s1 + $0xe0] sm:$0xff]  ;;  %v253_v49 = vld [vmem:[%s1837_s1 + $0xe8] sm:$0xff] }
  0x25   : > { %260 = vmatpush.msra.mxu0 %v219_v21  ;;  %v239_v21 = vld [vmem:[%s1837_s1 + $0x78] sm:$0xff] }
  0x27   : > { %261 = vmatpush.msra.mxu0 %v218_v24 }
  0x29   : > { %262 = vmatpush.msra.mxu0 %v217_v27  ;;  %v242_v27 = vld [vmem:[%s1837_s1 + $0x90] sm:$0xff] }
  0x2b   : > { %263 = vmatpush.msra.mxu0 %v216_v31  ;;  %v244_v31 = vld [vmem:[%s1837_s1 + $0xa0] sm:$0xff] }
  0x2d   : > { %264 = vmatpush.msra.mxu0 %v215_v34 }
  0x2f   : > { %265 = vmatpush.msra.mxu0 %v214_v37  ;;  %v247_v37 = vld [vmem:[%s1837_s1 + $0xb8] sm:$0xff] }
  0x31   : > { %266 = vmatpush.msra.mxu0 %v213_v40 }
  0x33   : > { %267 = vmatpush.msra.mxu0 %v212_v43  ;;  %v250_v43 = vld [vmem:[%s1837_s1 + $0xd0] sm:$0xff] }
  0x35   : > { %268 = vmatpush.msra.mxu0 %v211_v46 }
  0x37   : > { %269 = vmatpush.msra.mxu0 %v210_v48 }
  0x39   : > { %270 = vmatpush.msra.mxu0 %v209_v50 }
  0x3b   : > { %271 = vmatpush.msra.mxu0 %v208_v51  ;;  %v254_v51 = vld [vmem:[%s1837_s1 + $0xf0] sm:$0xff] }
  0x3c   : > { %272 = vmatmul.f32.vlgmr.msra.gmra.mxu0 %v224_v52 }
  0x44   : > { %275 = vmatmul.f32.gmra.mxu0 %v225_v53  ;;  %v255_v53 = vld [vmem:[%s1837_s1 + $0xf8] sm:$0xff] }
  0x4c   : > { %278 = vmatmul.f32.gmra.mxu0 %v226_v54 }
  0x54   : > { %281 = vmatmul.f32.gmra.mxu0 %v227_v55 }
  0x5c   : > { %284 = vmatmul.f32.gmra.mxu0 %v228_v56 }
  0x64   : > { %287 = vmatmul.f32.gmra.mxu0 %v229_v57 }
  0x6c   : > { %290 = vmatmul.f32.gmra.mxu0 %v230_v58 }
  0x74   : > { %293 = vmatmul.f32.gmra.mxu0 %v231_v59 }
  0x7c   : > { %296 = vmatmul.f32.gmra.mxu0 %v232_v60 }
  0x84   : > { %299 = vmatmul.f32.gmra.mxu0 %v233_v61 }
  0x8c   : > { %302 = vmatmul.f32.gmra.mxu0 %v234_v62 }
  0x94   : > { %305 = vmatmul.f32.gmra.mxu0 %v235_v8 }
  0x9c   : > { %308 = vmatmul.f32.gmra.mxu0 %v236_v18 }
  0xa4   : > { %311 = vmatmul.f32.gmra.mxu0 %v237_v19 }
  0xac   : > { %314 = vmatmul.f32.gmra.mxu0 %v238_v20 }
  0xb4   : > { %317 = vmatmul.f32.gmra.mxu0 %v239_v21 }
  0xb9   : > { %v273_v22 = vpop.f32.mrf.mxu0 }
  0xba   : > { %1007 = vmatmul.msk.f32.vlgmr.msra.gmra.mxu1 %vm387_vm0, %v273_v22  ;;  %1039 = vmatmul.msk.f32.vlgmr.msra.gmra.mxu2 %vm387_vm0, %v273_v22 }
  0xbb   : > { %1071 = vmatmul.msk.f32.vlgmr.msra.gmra.mxu3 %vm387_vm0, %v273_v22 }
  0xbc   : > { %320 = vmatmul.f32.gmra.mxu0 %v240_v23 }
  0xc1   : > { %v276_v24 = vpop.f32.mrf.mxu0 }
  0xc2   : > { %1008 = vmatmul.msk.f32.gmra.mxu1 %vm387_vm0, %v276_v24  ;;  %1040 = vmatmul.msk.f32.gmra.mxu2 %vm387_vm0, %v276_v24 }
  0xc3   : > { %1072 = vmatmul.msk.f32.gmra.mxu3 %vm387_vm0, %v276_v24 }
  0xc4   : > { %323 = vmatmul.f32.gmra.mxu0 %v241_v25 }
  0xc9   : > { %v279_v26 = vpop.f32.mrf.mxu0 }
  0xca   : > { %1009 = vmatmul.msk.f32.gmra.mxu1 %vm387_vm0, %v279_v26  ;;  %1041 = vmatmul.msk.f32.gmra.mxu2 %vm387_vm0, %v279_v26 }
  0xcb   : > { %1073 = vmatmul.msk.f32.gmra.mxu3 %vm387_vm0, %v279_v26 }
  0xcc   : > { %326 = vmatmul.f32.gmra.mxu0 %v242_v27 }
  0xd1   : > { %v282_v28 = vpop.f32.mrf.mxu0 }
  0xd2   : > { %1010 = vmatmul.msk.f32.gmra.mxu1 %vm387_vm0, %v282_v28  ;;  %1042 = vmatmul.msk.f32.gmra.mxu2 %vm387_vm0, %v282_v28 }
  0xd3   : > { %1074 = vmatmul.msk.f32.gmra.mxu3 %vm387_vm0, %v282_v28 }
  0xd4   : > { %329 = vmatmul.f32.gmra.mxu0 %v243_v29 }
  0xd9   : > { %v285_v30 = vpop.f32.mrf.mxu0 }
  0xda   : > { %1011 = vmatmul.msk.f32.gmra.mxu1 %vm387_vm0, %v285_v30  ;;  %1043 = vmatmul.msk.f32.gmra.mxu2 %vm387_vm0, %v285_v30 }
  0xdb   : > { %1075 = vmatmul.msk.f32.gmra.mxu3 %vm387_vm0, %v285_v30 }
  0xdc   : > { %332 = vmatmul.f32.gmra.mxu0 %v244_v31 }
  0xe1   : > { %v288_v32 = vpop.f32.mrf.mxu0 }
  0xe2   : > { %1012 = vmatmul.msk.f32.gmra.mxu1 %vm387_vm0, %v288_v32  ;;  %1044 = vmatmul.msk.f32.gmra.mxu2 %vm387_vm0, %v288_v32 }
  0xe3   : > { %1076 = vmatmul.msk.f32.gmra.mxu3 %vm387_vm0, %v288_v32 }
  0xe4   : > { %335 = vmatmul.f32.gmra.mxu0 %v245_v33 }
  0xe9   : > { %v291_v34 = vpop.f32.mrf.mxu0 }
  0xea   : > { %1013 = vmatmul.msk.f32.gmra.mxu1 %vm387_vm0, %v291_v34  ;;  %1045 = vmatmul.msk.f32.gmra.mxu2 %vm387_vm0, %v291_v34 }
  0xeb   : > { %1077 = vmatmul.msk.f32.gmra.mxu3 %vm387_vm0, %v291_v34 }
  0xec   : > { %338 = vmatmul.f32.gmra.mxu0 %v246_v35 }
  0xf1   : > { %v294_v36 = vpop.f32.mrf.mxu0 }
  0xf2   : > { %1014 = vmatmul.msk.f32.gmra.mxu1 %vm387_vm0, %v294_v36  ;;  %1046 = vmatmul.msk.f32.gmra.mxu2 %vm387_vm0, %v294_v36 }
  0xf3   : > { %1078 = vmatmul.msk.f32.gmra.mxu3 %vm387_vm0, %v294_v36 }
  0xf4   : > { %341 = vmatmul.f32.gmra.mxu0 %v247_v37 }
  0xf9   : > { %v297_v38 = vpop.f32.mrf.mxu0 }
  0xfa   : > { %1015 = vmatmul.msk.f32.gmra.mxu1 %vm387_vm0, %v297_v38  ;;  %1047 = vmatmul.msk.f32.gmra.mxu2 %vm387_vm0, %v297_v38 }
  0xfb   : > { %1079 = vmatmul.msk.f32.gmra.mxu3 %vm387_vm0, %v297_v38 }
  0xfc   : > { %344 = vmatmul.f32.gmra.mxu0 %v248_v39 }
 0x101   : > { %v300_v40 = vpop.f32.mrf.mxu0 }
 0x102   : > { %1016 = vmatmul.msk.f32.gmra.mxu1 %vm387_vm0, %v300_v40  ;;  %1048 = vmatmul.msk.f32.gmra.mxu2 %vm387_vm0, %v300_v40 }
 0x103   : > { %1080 = vmatmul.msk.f32.gmra.mxu3 %vm387_vm0, %v300_v40 }
 0x104   : > { %347 = vmatmul.f32.gmra.mxu0 %v249_v41 }
 0x109   : > { %v303_v42 = vpop.f32.mrf.mxu0 }
 0x10a   : > { %1017 = vmatmul.msk.f32.gmra.mxu1 %vm387_vm0, %v303_v42  ;;  %1049 = vmatmul.msk.f32.gmra.mxu2 %vm387_vm0, %v303_v42 }
 0x10b   : > { %1081 = vmatmul.msk.f32.gmra.mxu3 %vm387_vm0, %v303_v42 }
 0x10c   : > { %350 = vmatmul.f32.gmra.mxu0 %v250_v43 }
 0x111   : > { %v306_v44 = vpop.f32.mrf.mxu0 }
 0x112   : > { %1018 = vmatmul.msk.f32.gmra.mxu1 %vm387_vm0, %v306_v44  ;;  %1050 = vmatmul.msk.f32.gmra.mxu2 %vm387_vm0, %v306_v44 }
 0x113   : > { %1082 = vmatmul.msk.f32.gmra.mxu3 %vm387_vm0, %v306_v44 }
 0x114   : > { %353 = vmatmul.f32.gmra.mxu0 %v251_v45 }
 0x119   : > { %v309_v46 = vpop.f32.mrf.mxu0 }
 0x11a   : > { %1019 = vmatmul.msk.f32.gmra.mxu1 %vm387_vm0, %v309_v46  ;;  %1051 = vmatmul.msk.f32.gmra.mxu2 %vm387_vm0, %v309_v46 }
 0x11b   : > { %1083 = vmatmul.msk.f32.gmra.mxu3 %vm387_vm0, %v309_v46 }
 0x11c   : > { %356 = vmatmul.f32.gmra.mxu0 %v252_v47 }
 0x121   : > { %v312_v48 = vpop.f32.mrf.mxu0 }
 0x122   : > { %1020 = vmatmul.msk.f32.gmra.mxu1 %vm387_vm0, %v312_v48  ;;  %1052 = vmatmul.msk.f32.gmra.mxu2 %vm387_vm0, %v312_v48 }
 0x123   : > { %1084 = vmatmul.msk.f32.gmra.mxu3 %vm387_vm0, %v312_v48 }
 0x124   : > { %359 = vmatmul.f32.gmra.mxu0 %v253_v49 }
 0x129   : > { %v315_v50 = vpop.f32.mrf.mxu0 }
 0x12a   : > { %1021 = vmatmul.msk.f32.gmra.mxu1 %vm387_vm0, %v315_v50  ;;  %1053 = vmatmul.msk.f32.gmra.mxu2 %vm387_vm0, %v315_v50 }
 0x12b   : > { %1085 = vmatmul.msk.f32.gmra.mxu3 %vm387_vm0, %v315_v50 }
 0x12c   : > { %362 = vmatmul.f32.gmra.mxu0 %v254_v51 }
 0x131   : > { %v318_v52 = vpop.f32.mrf.mxu0 }
 0x132   : > { %1022 = vmatmul.msk.f32.gmra.mxu1 %vm387_vm0, %v318_v52  ;;  %1054 = vmatmul.msk.f32.gmra.mxu2 %vm387_vm0, %v318_v52 }
 0x133   : > { %1086 = vmatmul.msk.f32.gmra.mxu3 %vm387_vm0, %v318_v52 }
 0x134   : > { %365 = vmatmul.f32.gmra.mxu0 %v255_v53 }
 0x137   : > { %v501_v54 = vpop.f32.mrf.mxu1 }
 0x138   : > { %824 = vst.msk [vmem:[%s1560_s20] sm:$0xff] %vm823_vm1, %v501_v54 }
 0x139   : > { %v321_v55 = vpop.f32.mrf.mxu0 }
 0x13a   : > { %1023 = vmatmul.msk.f32.gmra.mxu1 %vm387_vm0, %v321_v55  ;;  %1055 = vmatmul.msk.f32.gmra.mxu2 %vm387_vm0, %v321_v55 }
 0x13b   : > { %1087 = vmatmul.msk.f32.gmra.mxu3 %vm387_vm0, %v321_v55 }
 0x13d   : > { %v614_v56 = vpop.f32.mrf.mxu2 }
 0x13e   : > { %1103 = vst.msk [vmem:[%s1560_s20 + $0x20] sm:$0xff] %vm823_vm1, %v614_v56  ;;  %v727_v57 = vpop.f32.mrf.mxu3 }
 0x13f   : > { %1135 = vst.msk [vmem:[%s1560_s20 + $0x40] sm:$0xff] %vm823_vm1, %v727_v57  ;;  %v504_v58 = vpop.f32.mrf.mxu1 }
 0x140   : > { %825 = vst.msk [vmem:[%s1560_s20 + $0x8] sm:$0xff] %vm823_vm1, %v504_v58 }
 0x141   : > { %v324_v59 = vpop.f32.mrf.mxu0 }
 0x142   : > { %1024 = vmatmul.msk.f32.gmra.mxu1 %vm387_vm0, %v324_v59  ;;  %1056 = vmatmul.msk.f32.gmra.mxu2 %vm387_vm0, %v324_v59 }
 0x143   : > { %1088 = vmatmul.msk.f32.gmra.mxu3 %vm387_vm0, %v324_v59 }
 0x145   : > { %v617_v60 = vpop.f32.mrf.mxu2 }
 0x146   : > { %1104 = vst.msk [vmem:[%s1560_s20 + $0x28] sm:$0xff] %vm823_vm1, %v617_v60  ;;  %v730_v61 = vpop.f32.mrf.mxu3 }
 0x147   : > { %1136 = vst.msk [vmem:[%s1560_s20 + $0x48] sm:$0xff] %vm823_vm1, %v730_v61  ;;  %v507_v62 = vpop.f32.mrf.mxu1 }
 0x148   : > { %826 = vst.msk [vmem:[%s1560_s20 + $0x10] sm:$0xff] %vm823_vm1, %v507_v62 }
 0x149   : > { %v327_v63 = vpop.f32.mrf.mxu0 }
 0x14a   : > { %1025 = vmatmul.msk.f32.gmra.mxu1 %vm387_vm0, %v327_v63  ;;  %1057 = vmatmul.msk.f32.gmra.mxu2 %vm387_vm0, %v327_v63 }
 0x14b   : > { %1089 = vmatmul.msk.f32.gmra.mxu3 %vm387_vm0, %v327_v63 }
 0x14d   : > { %v620_v0 = vpop.f32.mrf.mxu2 }
 0x14e   : > { %1105 = vst.msk [vmem:[%s1560_s20 + $0x30] sm:$0xff] %vm823_vm1, %v620_v0  ;;  %v733_v1 = vpop.f32.mrf.mxu3 }
 0x14f   : > { %1137 = vst.msk [vmem:[%s1560_s20 + $0x50] sm:$0xff] %vm823_vm1, %v733_v1  ;;  %v510_v2 = vpop.f32.mrf.mxu1 }
 0x150   : > { %827 = vst.msk [vmem:[%s1560_s20 + $0x18] sm:$0xff] %vm823_vm1, %v510_v2 }
 0x151   : > { %v330_v3 = vpop.f32.mrf.mxu0 }
 0x152   : > { %1026 = vmatmul.msk.f32.gmra.mxu1 %vm387_vm0, %v330_v3  ;;  %1058 = vmatmul.msk.f32.gmra.mxu2 %vm387_vm0, %v330_v3 }
 0x153   : > { %1090 = vmatmul.msk.f32.gmra.mxu3 %vm387_vm0, %v330_v3 }
 0x155   : > { %v623_v4 = vpop.f32.mrf.mxu2 }
 0x156   : > { %1106 = vst.msk [vmem:[%s1560_s20 + $0x38] sm:$0xff] %vm823_vm1, %v623_v4  ;;  %v736_v5 = vpop.f32.mrf.mxu3 }
 0x157   : > { %1138 = vst.msk [vmem:[%s1560_s20 + $0x58] sm:$0xff] %vm823_vm1, %v736_v5  ;;  %v513_v6 = vpop.f32.mrf.mxu1 }
 0x158   : > { %828 = vst.msk [vmem:[%s1560_s20 + $0x60] sm:$0xff] %vm823_vm1, %v513_v6 }
 0x159   : > { %v333_v7 = vpop.f32.mrf.mxu0 }
 0x15a   : > { %1027 = vmatmul.msk.f32.gmra.mxu1 %vm387_vm0, %v333_v7  ;;  %1059 = vmatmul.msk.f32.gmra.mxu2 %vm387_vm0, %v333_v7 }
 0x15b   : > { %1091 = vmatmul.msk.f32.gmra.mxu3 %vm387_vm0, %v333_v7 }
 0x15d   : > { %v626_v8 = vpop.f32.mrf.mxu2 }
 0x15e   : > { %1107 = vst.msk [vmem:[%s1560_s20 + $0x80] sm:$0xff] %vm823_vm1, %v626_v8  ;;  %v739_v9 = vpop.f32.mrf.mxu3 }
 0x15f   : > { %1139 = vst.msk [vmem:[%s1560_s20 + $0xa0] sm:$0xff] %vm823_vm1, %v739_v9  ;;  %v516_v10 = vpop.f32.mrf.mxu1 }
 0x160   : > { %829 = vst.msk [vmem:[%s1560_s20 + $0x68] sm:$0xff] %vm823_vm1, %v516_v10 }
 0x161   : > { %v336_v11 = vpop.f32.mrf.mxu0 }
 0x162   : > { %1028 = vmatmul.msk.f32.gmra.mxu1 %vm387_vm0, %v336_v11  ;;  %1060 = vmatmul.msk.f32.gmra.mxu2 %vm387_vm0, %v336_v11 }
 0x163   : > { %1092 = vmatmul.msk.f32.gmra.mxu3 %vm387_vm0, %v336_v11 }
 0x165   : > { %v629_v12 = vpop.f32.mrf.mxu2 }
 0x166   : > { %1108 = vst.msk [vmem:[%s1560_s20 + $0x88] sm:$0xff] %vm823_vm1, %v629_v12  ;;  %v742_v13 = vpop.f32.mrf.mxu3 }
 0x167   : > { %1140 = vst.msk [vmem:[%s1560_s20 + $0xa8] sm:$0xff] %vm823_vm1, %v742_v13  ;;  %v519_v14 = vpop.f32.mrf.mxu1 }
 0x168   : > { %830 = vst.msk [vmem:[%s1560_s20 + $0x70] sm:$0xff] %vm823_vm1, %v519_v14 }
 0x169   : > { %v339_v15 = vpop.f32.mrf.mxu0 }
 0x16a   : > { %1029 = vmatmul.msk.f32.gmra.mxu1 %vm387_vm0, %v339_v15  ;;  %1061 = vmatmul.msk.f32.gmra.mxu2 %vm387_vm0, %v339_v15 }
 0x16b   : > { %1093 = vmatmul.msk.f32.gmra.mxu3 %vm387_vm0, %v339_v15 }
 0x16d   : > { %v632_v16 = vpop.f32.mrf.mxu2 }
 0x16e   : > { %1109 = vst.msk [vmem:[%s1560_s20 + $0x90] sm:$0xff] %vm823_vm1, %v632_v16  ;;  %v745_v17 = vpop.f32.mrf.mxu3 }
 0x16f   : > { %1141 = vst.msk [vmem:[%s1560_s20 + $0xb0] sm:$0xff] %vm823_vm1, %v745_v17  ;;  %v522_v18 = vpop.f32.mrf.mxu1 }
 0x170   : > { %831 = vst.msk [vmem:[%s1560_s20 + $0x78] sm:$0xff] %vm823_vm1, %v522_v18 }
 0x171   : > { %v342_v19 = vpop.f32.mrf.mxu0 }
 0x172   : > { %1030 = vmatmul.msk.f32.gmra.mxu1 %vm387_vm0, %v342_v19  ;;  %1062 = vmatmul.msk.f32.gmra.mxu2 %vm387_vm0, %v342_v19 }
 0x173   : > { %1094 = vmatmul.msk.f32.gmra.mxu3 %vm387_vm0, %v342_v19 }
 0x175   : > { %v635_v20 = vpop.f32.mrf.mxu2 }
 0x176   : > { %1110 = vst.msk [vmem:[%s1560_s20 + $0x98] sm:$0xff] %vm823_vm1, %v635_v20  ;;  %v748_v21 = vpop.f32.mrf.mxu3 }
 0x177   : > { %1142 = vst.msk [vmem:[%s1560_s20 + $0xb8] sm:$0xff] %vm823_vm1, %v748_v21  ;;  %v525_v22 = vpop.f32.mrf.mxu1 }
 0x178   : > { %832 = vst.msk [vmem:[%s1560_s20 + $0xc0] sm:$0xff] %vm823_vm1, %v525_v22 }
 0x179   : > { %v345_v23 = vpop.f32.mrf.mxu0 }
 0x17a   : > { %1031 = vmatmul.msk.f32.gmra.mxu1 %vm387_vm0, %v345_v23  ;;  %1063 = vmatmul.msk.f32.gmra.mxu2 %vm387_vm0, %v345_v23 }
 0x17b   : > { %1095 = vmatmul.msk.f32.gmra.mxu3 %vm387_vm0, %v345_v23 }
 0x17d   : > { %v638_v24 = vpop.f32.mrf.mxu2 }
 0x17e   : > { %1111 = vst.msk [vmem:[%s1560_s20 + $0xe0] sm:$0xff] %vm823_vm1, %v638_v24  ;;  %v751_v25 = vpop.f32.mrf.mxu3 }
 0x17f   : > { %1143 = vst.msk [vmem:[%s1560_s20 + $0x100] sm:$0xff] %vm823_vm1, %v751_v25  ;;  %v528_v26 = vpop.f32.mrf.mxu1 }
 0x180   : > { %833 = vst.msk [vmem:[%s1560_s20 + $0xc8] sm:$0xff] %vm823_vm1, %v528_v26 }
 0x181   : > { %v348_v27 = vpop.f32.mrf.mxu0 }
 0x182   : > { %1032 = vmatmul.msk.f32.gmra.mxu1 %vm387_vm0, %v348_v27  ;;  %1064 = vmatmul.msk.f32.gmra.mxu2 %vm387_vm0, %v348_v27 }
 0x183   : > { %1096 = vmatmul.msk.f32.gmra.mxu3 %vm387_vm0, %v348_v27 }
 0x185   : > { %v641_v28 = vpop.f32.mrf.mxu2 }
 0x186   : > { %1112 = vst.msk [vmem:[%s1560_s20 + $0xe8] sm:$0xff] %vm823_vm1, %v641_v28  ;;  %v754_v29 = vpop.f32.mrf.mxu3 }
 0x187   : > { %1144 = vst.msk [vmem:[%s1560_s20 + $0x108] sm:$0xff] %vm823_vm1, %v754_v29  ;;  %v531_v30 = vpop.f32.mrf.mxu1 }
 0x188   : > { %834 = vst.msk [vmem:[%s1560_s20 + $0xd0] sm:$0xff] %vm823_vm1, %v531_v30 }
 0x189   : > { %v351_v31 = vpop.f32.mrf.mxu0 }
 0x18a   : > { %1033 = vmatmul.msk.f32.gmra.mxu1 %vm387_vm0, %v351_v31  ;;  %1065 = vmatmul.msk.f32.gmra.mxu2 %vm387_vm0, %v351_v31 }
 0x18b   : > { %1097 = vmatmul.msk.f32.gmra.mxu3 %vm387_vm0, %v351_v31 }
 0x18d   : > { %v644_v32 = vpop.f32.mrf.mxu2 }
 0x18e   : > { %1113 = vst.msk [vmem:[%s1560_s20 + $0xf0] sm:$0xff] %vm823_vm1, %v644_v32  ;;  %v757_v33 = vpop.f32.mrf.mxu3 }
 0x18f   : > { %1145 = vst.msk [vmem:[%s1560_s20 + $0x110] sm:$0xff] %vm823_vm1, %v757_v33  ;;  %v534_v34 = vpop.f32.mrf.mxu1 }
 0x190   : > { %835 = vst.msk [vmem:[%s1560_s20 + $0xd8] sm:$0xff] %vm823_vm1, %v534_v34 }
 0x191   : > { %v354_v35 = vpop.f32.mrf.mxu0 }
 0x192   : > { %1034 = vmatmul.msk.f32.gmra.mxu1 %vm387_vm0, %v354_v35  ;;  %1066 = vmatmul.msk.f32.gmra.mxu2 %vm387_vm0, %v354_v35 }
 0x193   : > { %1098 = vmatmul.msk.f32.gmra.mxu3 %vm387_vm0, %v354_v35 }
 0x195   : > { %v647_v36 = vpop.f32.mrf.mxu2 }
 0x196   : > { %1114 = vst.msk [vmem:[%s1560_s20 + $0xf8] sm:$0xff] %vm823_vm1, %v647_v36  ;;  %v760_v37 = vpop.f32.mrf.mxu3 }
 0x197   : > { %1146 = vst.msk [vmem:[%s1560_s20 + $0x118] sm:$0xff] %vm823_vm1, %v760_v37  ;;  %v537_v38 = vpop.f32.mrf.mxu1 }
 0x198   : > { %836 = vst.msk [vmem:[%s1560_s20 + $0x120] sm:$0xff] %vm823_vm1, %v537_v38 }
 0x199   : > { %v357_v39 = vpop.f32.mrf.mxu0 }
 0x19a   : > { %1035 = vmatmul.msk.f32.gmra.mxu1 %vm387_vm0, %v357_v39  ;;  %1067 = vmatmul.msk.f32.gmra.mxu2 %vm387_vm0, %v357_v39 }
 0x19b   : > { %1099 = vmatmul.msk.f32.gmra.mxu3 %vm387_vm0, %v357_v39 }
 0x19d   : > { %v650_v40 = vpop.f32.mrf.mxu2 }
 0x19e   : > { %1115 = vst.msk [vmem:[%s1560_s20 + $0x140] sm:$0xff] %vm823_vm1, %v650_v40  ;;  %v763_v41 = vpop.f32.mrf.mxu3 }
 0x19f   : > { %1147 = vst.msk [vmem:[%s1560_s20 + $0x160] sm:$0xff] %vm823_vm1, %v763_v41  ;;  %v540_v42 = vpop.f32.mrf.mxu1 }
 0x1a0   : > { %837 = vst.msk [vmem:[%s1560_s20 + $0x128] sm:$0xff] %vm823_vm1, %v540_v42 }
 0x1a1   : > { %v360_v43 = vpop.f32.mrf.mxu0 }
 0x1a2   : > { %1036 = vmatmul.msk.f32.gmra.mxu1 %vm387_vm0, %v360_v43  ;;  %1068 = vmatmul.msk.f32.gmra.mxu2 %vm387_vm0, %v360_v43 }
 0x1a3   : > { %1100 = vmatmul.msk.f32.gmra.mxu3 %vm387_vm0, %v360_v43 }
 0x1a5   : > { %v653_v44 = vpop.f32.mrf.mxu2 }
 0x1a6   : > { %1116 = vst.msk [vmem:[%s1560_s20 + $0x148] sm:$0xff] %vm823_vm1, %v653_v44  ;;  %v766_v45 = vpop.f32.mrf.mxu3 }
 0x1a7   : > { %1148 = vst.msk [vmem:[%s1560_s20 + $0x168] sm:$0xff] %vm823_vm1, %v766_v45  ;;  %v543_v46 = vpop.f32.mrf.mxu1 }
 0x1a8   : > { %838 = vst.msk [vmem:[%s1560_s20 + $0x130] sm:$0xff] %vm823_vm1, %v543_v46 }
 0x1a9   : > { %v363_v47 = vpop.f32.mrf.mxu0 }
 0x1aa   : > { %1037 = vmatmul.msk.f32.gmra.mxu1 %vm387_vm0, %v363_v47  ;;  %1069 = vmatmul.msk.f32.gmra.mxu2 %vm387_vm0, %v363_v47 }
 0x1ab   : > { %1101 = vmatmul.msk.f32.gmra.mxu3 %vm387_vm0, %v363_v47 }
 0x1ad   : > { %v656_v48 = vpop.f32.mrf.mxu2 }
 0x1ae   : > { %1117 = vst.msk [vmem:[%s1560_s20 + $0x150] sm:$0xff] %vm823_vm1, %v656_v48  ;;  %v769_v49 = vpop.f32.mrf.mxu3 }
 0x1af   : > { %1149 = vst.msk [vmem:[%s1560_s20 + $0x170] sm:$0xff] %vm823_vm1, %v769_v49  ;;  %v546_v50 = vpop.f32.mrf.mxu1 }
 0x1b0   : > { %839 = vst.msk [vmem:[%s1560_s20 + $0x138] sm:$0xff] %vm823_vm1, %v546_v50 }
 0x1b1   : > { %v366_v51 = vpop.f32.mrf.mxu0 }
 0x1b2   : > { %1038 = vmatmul.msk.f32.gmra.mxu1 %vm387_vm0, %v366_v51  ;;  %1070 = vmatmul.msk.f32.gmra.mxu2 %vm387_vm0, %v366_v51 }
 0x1b3   : > { %1102 = vmatmul.msk.f32.gmra.mxu3 %vm387_vm0, %v366_v51 }
 0x1b5   : > { %v659_v52 = vpop.f32.mrf.mxu2 }
 0x1b6   : > { %1118 = vst.msk [vmem:[%s1560_s20 + $0x158] sm:$0xff] %vm823_vm1, %v659_v52  ;;  %v772_v53 = vpop.f32.mrf.mxu3 }
 0x1b7   : > { %1150 = vst.msk [vmem:[%s1560_s20 + $0x178] sm:$0xff] %vm823_vm1, %v772_v53  ;;  %v549_v54 = vpop.f32.mrf.mxu1 }
 0x1b8   : > { %840 = vst.msk [vmem:[%s1560_s20 + $0x180] sm:$0xff] %vm823_vm1, %v549_v54 }
 0x1bd   : > { %v662_v55 = vpop.f32.mrf.mxu2 }
 0x1be   : > { %1119 = vst.msk [vmem:[%s1560_s20 + $0x1a0] sm:$0xff] %vm823_vm1, %v662_v55  ;;  %v775_v56 = vpop.f32.mrf.mxu3 }
 0x1bf   : > { %1151 = vst.msk [vmem:[%s1560_s20 + $0x1c0] sm:$0xff] %vm823_vm1, %v775_v56  ;;  %v552_v57 = vpop.f32.mrf.mxu1 }
 0x1c0   : > { %841 = vst.msk [vmem:[%s1560_s20 + $0x188] sm:$0xff] %vm823_vm1, %v552_v57 }
 0x1c5   : > { %v665_v58 = vpop.f32.mrf.mxu2 }
 0x1c6   : > { %1120 = vst.msk [vmem:[%s1560_s20 + $0x1a8] sm:$0xff] %vm823_vm1, %v665_v58  ;;  %v778_v59 = vpop.f32.mrf.mxu3 }
 0x1c7   : > { %1152 = vst.msk [vmem:[%s1560_s20 + $0x1c8] sm:$0xff] %vm823_vm1, %v778_v59  ;;  %v555_v60 = vpop.f32.mrf.mxu1 }
 0x1c8   : > { %842 = vst.msk [vmem:[%s1560_s20 + $0x190] sm:$0xff] %vm823_vm1, %v555_v60 }
 0x1cd   : > { %v668_v61 = vpop.f32.mrf.mxu2 }
 0x1ce   : > { %1121 = vst.msk [vmem:[%s1560_s20 + $0x1b0] sm:$0xff] %vm823_vm1, %v668_v61  ;;  %v781_v62 = vpop.f32.mrf.mxu3 }
 0x1cf   : > { %1153 = vst.msk [vmem:[%s1560_s20 + $0x1d0] sm:$0xff] %vm823_vm1, %v781_v62  ;;  %v558_v63 = vpop.f32.mrf.mxu1 }
 0x1d0   : > { %843 = vst.msk [vmem:[%s1560_s20 + $0x198] sm:$0xff] %vm823_vm1, %v558_v63 }
 0x1d5   : > { %v671_v0 = vpop.f32.mrf.mxu2 }
 0x1d6   : > { %1122 = vst.msk [vmem:[%s1560_s20 + $0x1b8] sm:$0xff] %vm823_vm1, %v671_v0  ;;  %v784_v1 = vpop.f32.mrf.mxu3 }
 0x1d7   : > { %1154 = vst.msk [vmem:[%s1560_s20 + $0x1d8] sm:$0xff] %vm823_vm1, %v784_v1  ;;  %v561_v2 = vpop.f32.mrf.mxu1 }
 0x1d8   : > { %844 = vst.msk [vmem:[%s1560_s20 + $0x1e0] sm:$0xff] %vm823_vm1, %v561_v2 }
 0x1dd   : > { %v674_v3 = vpop.f32.mrf.mxu2 }
 0x1de   : > { %1123 = vst.msk [vmem:[%s1560_s20 + $0x200] sm:$0xff] %vm823_vm1, %v674_v3  ;;  %v787_v4 = vpop.f32.mrf.mxu3 }
 0x1df   : > { %1155 = vst.msk [vmem:[%s1560_s20 + $0x220] sm:$0xff] %vm823_vm1, %v787_v4  ;;  %v564_v5 = vpop.f32.mrf.mxu1 }
 0x1e0   : > { %845 = vst.msk [vmem:[%s1560_s20 + $0x1e8] sm:$0xff] %vm823_vm1, %v564_v5 }
 0x1e5   : > { %v677_v6 = vpop.f32.mrf.mxu2 }
 0x1e6   : > { %1124 = vst.msk [vmem:[%s1560_s20 + $0x208] sm:$0xff] %vm823_vm1, %v677_v6  ;;  %v790_v7 = vpop.f32.mrf.mxu3 }
 0x1e7   : > { %1156 = vst.msk [vmem:[%s1560_s20 + $0x228] sm:$0xff] %vm823_vm1, %v790_v7  ;;  %v567_v8 = vpop.f32.mrf.mxu1 }
 0x1e8   : > { %846 = vst.msk [vmem:[%s1560_s20 + $0x1f0] sm:$0xff] %vm823_vm1, %v567_v8 }
 0x1ed   : > { %v680_v9 = vpop.f32.mrf.mxu2 }
 0x1ee   : > { %1125 = vst.msk [vmem:[%s1560_s20 + $0x210] sm:$0xff] %vm823_vm1, %v680_v9  ;;  %v793_v10 = vpop.f32.mrf.mxu3 }
 0x1ef   : > { %1157 = vst.msk [vmem:[%s1560_s20 + $0x230] sm:$0xff] %vm823_vm1, %v793_v10  ;;  %v570_v11 = vpop.f32.mrf.mxu1 }
 0x1f0   : > { %847 = vst.msk [vmem:[%s1560_s20 + $0x1f8] sm:$0xff] %vm823_vm1, %v570_v11 }
 0x1f5   : > { %v683_v12 = vpop.f32.mrf.mxu2 }
 0x1f6   : > { %1126 = vst.msk [vmem:[%s1560_s20 + $0x218] sm:$0xff] %vm823_vm1, %v683_v12  ;;  %v796_v13 = vpop.f32.mrf.mxu3 }
 0x1f7   : > { %1158 = vst.msk [vmem:[%s1560_s20 + $0x238] sm:$0xff] %vm823_vm1, %v796_v13  ;;  %v573_v14 = vpop.f32.mrf.mxu1 }
 0x1f8   : > { %848 = vst.msk [vmem:[%s1560_s20 + $0x240] sm:$0xff] %vm823_vm1, %v573_v14 }
 0x1fd   : > { %v686_v15 = vpop.f32.mrf.mxu2 }
 0x1fe   : > { %1127 = vst.msk [vmem:[%s1560_s20 + $0x260] sm:$0xff] %vm823_vm1, %v686_v15  ;;  %v799_v16 = vpop.f32.mrf.mxu3 }
 0x1ff   : > { %1159 = vst.msk [vmem:[%s1560_s20 + $0x280] sm:$0xff] %vm823_vm1, %v799_v16  ;;  %v576_v17 = vpop.f32.mrf.mxu1 }
 0x200   : > { %849 = vst.msk [vmem:[%s1560_s20 + $0x248] sm:$0xff] %vm823_vm1, %v576_v17 }
 0x205   : > { %v689_v18 = vpop.f32.mrf.mxu2 }
 0x206   : > { %1128 = vst.msk [vmem:[%s1560_s20 + $0x268] sm:$0xff] %vm823_vm1, %v689_v18  ;;  %v802_v19 = vpop.f32.mrf.mxu3 }
 0x207   : > { %1160 = vst.msk [vmem:[%s1560_s20 + $0x288] sm:$0xff] %vm823_vm1, %v802_v19  ;;  %v579_v20 = vpop.f32.mrf.mxu1 }
 0x208   : > { %850 = vst.msk [vmem:[%s1560_s20 + $0x250] sm:$0xff] %vm823_vm1, %v579_v20 }
 0x20d   : > { %v692_v21 = vpop.f32.mrf.mxu2 }
 0x20e   : > { %1129 = vst.msk [vmem:[%s1560_s20 + $0x270] sm:$0xff] %vm823_vm1, %v692_v21  ;;  %v805_v22 = vpop.f32.mrf.mxu3 }
 0x20f   : > { %1161 = vst.msk [vmem:[%s1560_s20 + $0x290] sm:$0xff] %vm823_vm1, %v805_v22  ;;  %v582_v23 = vpop.f32.mrf.mxu1 }
 0x210   : > { %851 = vst.msk [vmem:[%s1560_s20 + $0x258] sm:$0xff] %vm823_vm1, %v582_v23 }
 0x215   : > { %v695_v24 = vpop.f32.mrf.mxu2 }
 0x216   : > { %1130 = vst.msk [vmem:[%s1560_s20 + $0x278] sm:$0xff] %vm823_vm1, %v695_v24  ;;  %v808_v25 = vpop.f32.mrf.mxu3 }
 0x217   : > { %1162 = vst.msk [vmem:[%s1560_s20 + $0x298] sm:$0xff] %vm823_vm1, %v808_v25  ;;  %v585_v26 = vpop.f32.mrf.mxu1 }
 0x218   : > { %852 = vst.msk [vmem:[%s1560_s20 + $0x2a0] sm:$0xff] %vm823_vm1, %v585_v26 }
 0x21d   : > { %v698_v27 = vpop.f32.mrf.mxu2 }
 0x21e   : > { %1131 = vst.msk [vmem:[%s1560_s20 + $0x2c0] sm:$0xff] %vm823_vm1, %v698_v27  ;;  %v811_v28 = vpop.f32.mrf.mxu3 }
 0x21f   : > { %1163 = vst.msk [vmem:[%s1560_s20 + $0x2e0] sm:$0xff] %vm823_vm1, %v811_v28  ;;  %v588_v29 = vpop.f32.mrf.mxu1 }
 0x220   : > { %853 = vst.msk [vmem:[%s1560_s20 + $0x2a8] sm:$0xff] %vm823_vm1, %v588_v29 }
 0x225   : > { %v701_v30 = vpop.f32.mrf.mxu2 }
 0x226   : > { %1132 = vst.msk [vmem:[%s1560_s20 + $0x2c8] sm:$0xff] %vm823_vm1, %v701_v30  ;;  %v814_v31 = vpop.f32.mrf.mxu3 }
 0x227   : > { %1164 = vst.msk [vmem:[%s1560_s20 + $0x2e8] sm:$0xff] %vm823_vm1, %v814_v31  ;;  %v591_v32 = vpop.f32.mrf.mxu1 }
 0x228   : > { %854 = vst.msk [vmem:[%s1560_s20 + $0x2b0] sm:$0xff] %vm823_vm1, %v591_v32 }
 0x22d   : > { %v704_v33 = vpop.f32.mrf.mxu2 }
 0x22e   : > { %1133 = vst.msk [vmem:[%s1560_s20 + $0x2d0] sm:$0xff] %vm823_vm1, %v704_v33  ;;  %v817_v34 = vpop.f32.mrf.mxu3 }
 0x22f   : > { %1165 = vst.msk [vmem:[%s1560_s20 + $0x2f0] sm:$0xff] %vm823_vm1, %v817_v34  ;;  %v594_v35 = vpop.f32.mrf.mxu1 }
 0x230   : > { %855 = vst.msk [vmem:[%s1560_s20 + $0x2b8] sm:$0xff] %vm823_vm1, %v594_v35 }
 0x235   : > { %v707_v36 = vpop.f32.mrf.mxu2 }
 0x236   : > { %1134 = vst.msk [vmem:[%s1560_s20 + $0x2d8] sm:$0xff] %vm823_vm1, %v707_v36  ;;  %v820_v37 = vpop.f32.mrf.mxu3 }
 0x237   : > { %1166 = vst.msk [vmem:[%s1560_s20 + $0x2f8] sm:$0xff] %vm823_vm1, %v820_v37 }
 0x238   : > { %1242 = shalt.err (!%p1239_p3)
}
 0x239   : > { %s1279_s10 = smov 128   ;;  %s1280_s11 = smov 8  }
 0x23a   : > { %1174 = dma.vmem_to_hbm [thread:$0]  (%p1339_p5), %s937_s28, 12288, %s939_s29, %s923_s16, %s1279_s10, %s1279_s10, %s1280_s11  }
 0x23b PF: > { %p1180_p4 = scmp.ge.s32.totalorder %s1277_s15, 2  ;;  %s953_s17 = sand.u32 1, %s1265_s12  }
 0x23c   : > { %s954_s19 = scalar_lea.sflag [#allocation3], %s953_s17 }
 0x23d   : > { %p1177_p7 = pnand %p1180_p4, %p1343_p6 }
 0x23f   : > { %p1178_p8 = pneg %p1177_p7 }
 0x241   : > { %1260 = dma.done.wait (%p1178_p8), %s954_s19, 12288  }
 0x242   : > { %1262 = vsyncadd (%p1178_p8), %s954_s19, 4294955008  ;;  %p13_p9 = scmp.ge.s32.totalorder %s1326_s18, 4   ;;  %s1842_s12 = smov %s1269_s13 }
 0x243   : > { %s1843_s13 = smov %s1273_s14  ;;  %s1844_s14 = smov %s1337_s21 }
 0x244   : > { %s1845_s15 = smov %s1326_s18  ;;  %15 = sbr.rel (!%p13_p9) target bundleno = 3 (0x3), region = 69 }
 0x249   :  { %960 = vsyncpa [#allocation3], 1 }
 0x24a   :  { %962 = vsyncpa [#allocation3 + $0x1], 1 }

</bundles_post_ra>
